<compile_context>
chip_gen: v7x
topology: tpu7x:2x2x1
jax: 0.10.0
libtpu: 0.0.40
codegen_flags: <defaults>
</compile_context>

<pallas_src>
import functools

import jax
import jax.numpy as jnp
from jax.experimental import pallas as pl
from jax.experimental.pallas import tpu as pltpu


def _round_up(x, m):
    return (x + m - 1) // m * m


# ----------------------------------------------------------------------------
# Kernel: one batch tile, 3 fused matmuls + bias/relu/sigmoid epilogue.
# Parameter slab layout (f32, zero-padded to (4, Rmax, Cmax)):
#   p[0, :Z,  :H]      = W1.T                   p[3, 0, :H]    = b1
#   p[1, :H,  :2H]     = [W2.T | W2_84.T]       p[3, 1, :2H]   = [b2 | b2_84]
#   p[2, :2H, :2Y]     = blkdiag(W3.T, W3_84.T) p[3, 2, :2Y]   = [b3 | b3_84]
# Zero-padded rows/columns are exact no-ops (relu(0+0)=0 feeds zero rows).
# ----------------------------------------------------------------------------
def _decoder_kernel(z_ref, p_ref, out_ref, *, Zp, Hp, H2p, Y2):
    z = z_ref[...]                                        # (TB, Zp)

    # layer 1 (shared g_1) -> relu; full 128-lane weight/bias tiles.
    w1 = p_ref[0, :Zp, :Hp]                               # (Zp, Hp) unmasked
    b1 = p_ref[3, 0:1, :Hp]                               # (1, Hp)
    h1 = jnp.maximum(
        jnp.dot(z, w1, preferred_element_type=jnp.float32) + b1, 0.0)

    # layer 2, both branches fused: cols [0:H]=g_2, [H:2H]=g_2_84.
    w2 = p_ref[1, :Hp, :H2p]                              # (Hp, H2p) unmasked
    b2 = p_ref[3, 1:2, :H2p]                              # (1, H2p)
    h2 = jnp.maximum(
        jnp.dot(h1, w2, preferred_element_type=jnp.float32) + b2, 0.0)

    # layer 3, block-diagonal fusion, narrowed to the 2Y live lanes so the
    # sigmoid (EUP) and the HBM store only touch useful data.
    w3 = p_ref[2, :H2p, :Y2]                              # (H2p, Y2)
    b3 = p_ref[3, 2:3, :Y2]                               # (1, Y2)
    logits = jnp.dot(h2, w3, preferred_element_type=jnp.float32) + b3
    out_ref[...] = jax.nn.sigmoid(logits).astype(out_ref.dtype)


# ----------------------------------------------------------------------------
# One-time parameter preprocessing: transpose to [in,out], fuse the two
# branches, pack everything into a single padded slab (one DMA per call).
# ----------------------------------------------------------------------------
def prepare_params(params):
    w1 = jnp.asarray(params["w1"], jnp.float32)      # [H, Z]
    w2 = jnp.asarray(params["w2"], jnp.float32)      # [H, H]
    w3 = jnp.asarray(params["w3"], jnp.float32)      # [Y, H]
    w2_84 = jnp.asarray(params["w2_84"], jnp.float32)
    w3_84 = jnp.asarray(params["w3_84"], jnp.float32)

    H, Z = w1.shape
    Y = w3.shape[0]

    Zp = _round_up(Z, 8)           # z lane width (kept narrow: read stream)
    Hp = _round_up(H, 128)         # layer-1 output width / layer-2 K
    H2p = _round_up(2 * H, 128)    # fused layer-2 output width / layer-3 K
    Y2 = 2 * Y                     # output width (unpadded -> narrow store)

    Rmax = max(Zp, Hp, H2p)                      # multiple of 8
    Cmax = max(Hp, H2p, _round_up(Y2, 128))      # multiple of 128

    slab = jnp.zeros((4, Rmax, Cmax), jnp.float32)
    # layer 1
    slab = slab.at[0, :Z, :H].set(w1.T)
    slab = slab.at[3, 0, :H].set(jnp.asarray(params["b1"], jnp.float32))
    # layer 2 (branches concatenated column-wise)
    slab = slab.at[1, :H, :H].set(w2.T)
    slab = slab.at[1, :H, H:2 * H].set(w2_84.T)
    slab = slab.at[3, 1, :H].set(jnp.asarray(params["b2"], jnp.float32))
    slab = slab.at[3, 1, H:2 * H].set(jnp.asarray(params["b2_84"], jnp.float32))
    # layer 3 (block-diagonal; branch 2 reads only the h2[:, H:2H] columns)
    slab = slab.at[2, :H, :Y].set(w3.T)
    slab = slab.at[2, H:2 * H, Y:2 * Y].set(w3_84.T)
    slab = slab.at[3, 2, :Y].set(jnp.asarray(params["b3"], jnp.float32))
    slab = slab.at[3, 2, Y:2 * Y].set(jnp.asarray(params["b3_84"], jnp.float32))

    dims = dict(Z=Z, Zp=Zp, Hp=Hp, H2p=H2p, Y=Y, Y2=Y2)
    return slab, dims


# ----------------------------------------------------------------------------
# Per-call wrapper: batch tiling + the pallas_call + output slicing.
# ----------------------------------------------------------------------------
def decoder_forward(z_sample, packed, *, tb=2048):
    slab, dims = packed
    Z, Zp, Hp, H2p, Y, Y2 = (dims["Z"], dims["Zp"], dims["Hp"],
                             dims["H2p"], dims["Y"], dims["Y2"])

    z = jnp.asarray(z_sample, jnp.float32)
    B = z.shape[0]
    if Zp != Z:
        z = jnp.pad(z, ((0, 0), (0, Zp - Z)))

    # Batch tile: multiple of 8 sublanes (correctness for any user tb), large
    # to amortize the ~0.35us/grid-step overhead, but capped so the grid keeps
    # >=2 steps when the batch allows (both v7x TensorCores get work).
    TB = _round_up(min(tb, max(B, 1)), 8)
    if B >= 16 and (B + TB - 1) // TB < 2:
        TB = _round_up((B + 1) // 2, 8)
    Bp = _round_up(B, TB)
    if Bp != B:
        z = jnp.pad(z, ((0, Bp - B), (0, 0)))

    kernel = functools.partial(_decoder_kernel, Zp=Zp, Hp=Hp, H2p=H2p, Y2=Y2)

    out = pl.pallas_call(
        kernel,
        out_shape=jax.ShapeDtypeStruct((Bp, Y2), jnp.float32),
        grid=(Bp // TB,),
        in_specs=[
            pl.BlockSpec((TB, Zp), lambda i: (i, 0)),        # batch tile of z
            # constant index_map -> slab DMA'd once, stays VMEM-resident
            pl.BlockSpec(slab.shape, lambda i: (0, 0, 0)),
        ],
        out_specs=pl.BlockSpec((TB, Y2), lambda i: (i, 0)),
        compiler_params=pltpu.CompilerParams(
            dimension_semantics=("parallel",)),
    )(z, slab)

    y_hat = out[:B, :Y]
    y_hat_84 = out[:B, Y:Y2]
    return y_hat, y_hat_84


# ----------------------------------------------------------------------------
# Deterministic synthetic init (PyTorch nn.Linear shapes: W[out,in], b[out]).
# ----------------------------------------------------------------------------
def init_params(key, z_dim, hidden, y_dim):
    ks = jax.random.split(key, 10)

    def lin(kw, kb, fan_in, fan_out):
        bound = 1.0 / jnp.sqrt(fan_in)
        w = jax.random.uniform(kw, (fan_out, fan_in), jnp.float32, -bound, bound)
        b = jax.random.uniform(kb, (fan_out,), jnp.float32, -bound, bound)
        return w, b

    w1, b1 = lin(ks[0], ks[1], z_dim, hidden)
    w2, b2 = lin(ks[2], ks[3], hidden, hidden)
    w3, b3 = lin(ks[4], ks[5], hidden, y_dim)
    w2_84, b2_84 = lin(ks[6], ks[7], hidden, hidden)
    w3_84, b3_84 = lin(ks[8], ks[9], hidden, y_dim)
    return dict(w1=w1, b1=b1, w2=w2, b2=b2, w3=w3, b3=b3,
                w2_84=w2_84, b2_84=b2_84, w3_84=w3_84, b3_84=b3_84)


def reference_forward(z, p):
    """Pure-JAX reference mirroring the PyTorch forward."""
    h1 = jnp.maximum(z @ p["w1"].T + p["b1"], 0.0)
    h2 = jnp.maximum(h1 @ p["w2"].T + p["b2"], 0.0)
    y = jax.nn.sigmoid(h2 @ p["w3"].T + p["b3"])
    h2_84 = jnp.maximum(h1 @ p["w2_84"].T + p["b2_84"], 0.0)
    y84 = jax.nn.sigmoid(h2_84 @ p["w3_84"].T + p["b3_84"])
    return y, y84


if __name__ == "__main__":
    key = jax.random.PRNGKey(0)
    k_param, k_z = jax.random.split(key)

    batch = 8       # number of z samples
    z_dim = 8       # args.z_dim
    hidden = 32     # args.hidden_neuron_num
    y_dim = 16      # y.shape[1]

    params = init_params(k_param, z_dim, hidden, y_dim)
    z_sample = jax.random.normal(k_z, (batch, z_dim), jnp.float32)

    packed = prepare_params(params)               # one-time: fuse + pack + pad
    packed = (jax.block_until_ready(packed[0]), packed[1])

    y_hat, y_hat_84 = decoder_forward(z_sample, packed)
    jax.block_until_ready((y_hat, y_hat_84))

    y_ref, y84_ref = reference_forward(z_sample, params)
    assert y_hat.shape == (batch, y_dim) and y_hat_84.shape == (batch, y_dim)
    assert jnp.allclose(y_hat, y_ref, atol=1e-5), "branch-1 mismatch"
    assert jnp.allclose(y_hat_84, y84_ref, atol=1e-5), "branch-2 mismatch"

    print("KERNEL_OK")
</pallas_src>

<mosaic_0001>
module attributes {stable_mosaic.version = 11 : i64} {
  func.func @_decoder_kernel(%arg0: i32, %arg1: memref<8x8xf32, #tpu.memory_space<vmem>>, %arg2: memref<4x128x128xf32, #tpu.memory_space<vmem>>, %arg3: memref<8x32xf32, #tpu.memory_space<vmem>>) attributes {dimension_semantics = [#tpu.dimension_semantics<parallel>], iteration_bounds = array<i64: 1>, scalar_prefetch = 0 : i64, scratch_operands = 0 : i64, tpu.core_type = #tpu.core_type<tc>, window_params = [{transform_indices = @transform_0, window_bounds = array<i64: 8, 8>}, {pipeline_mode = #tpu.pipeline_mode<synchronous>, transform_indices = @transform_1, window_bounds = array<i64: 4, 128, 128>}, {transform_indices = @transform_2, window_bounds = array<i64: 8, 32>}]} {
    %c0 = arith.constant 0 : index
    %c0_0 = arith.constant 0 : index
    %0 = vector.load %arg1[%c0, %c0_0] : memref<8x8xf32, #tpu.memory_space<vmem>>, vector<8x8xf32>
    %c0_1 = arith.constant 0 : index
    %c0_2 = arith.constant 0 : index
    %c0_3 = arith.constant 0 : index
    %1 = vector.load %arg2[%c0_1, %c0_2, %c0_3] : memref<4x128x128xf32, #tpu.memory_space<vmem>>, vector<1x8x128xf32>
    %2 = vector.shape_cast %1 : vector<1x8x128xf32> to vector<8x128xf32>
    %c3 = arith.constant 3 : index
    %c0_4 = arith.constant 0 : index
    %c0_5 = arith.constant 0 : index
    %3 = vector.load %arg2[%c3, %c0_4, %c0_5] : memref<4x128x128xf32, #tpu.memory_space<vmem>>, vector<1x1x128xf32>
    %4 = vector.shape_cast %3 : vector<1x1x128xf32> to vector<1x128xf32>
    %cst = arith.constant dense<0.000000e+00> : vector<8x128xf32>
    %5 = tpu.matmul %0, %2, %cst {dimension_numbers = #tpu.dot_dimension_numbers<[1], [0], [0], [1], [0, 0, 1, 1], [], []>} : vector<8x8xf32>, vector<8x128xf32>, vector<8x128xf32> -> vector<8x128xf32>
    %6 = vector.broadcast %4 : vector<1x128xf32> to vector<8x128xf32>
    %7 = arith.addf %5, %6 : vector<8x128xf32>
    %cst_6 = arith.constant 0.000000e+00 : f32
    %8 = vector.broadcast %cst_6 : f32 to vector<8x128xf32>
    %9 = arith.maximumf %7, %8 : vector<8x128xf32>
    %c1 = arith.constant 1 : index
    %c0_7 = arith.constant 0 : index
    %c0_8 = arith.constant 0 : index
    %10 = vector.load %arg2[%c1, %c0_7, %c0_8] : memref<4x128x128xf32, #tpu.memory_space<vmem>>, vector<1x128x128xf32>
    %11 = vector.shape_cast %10 : vector<1x128x128xf32> to vector<128x128xf32>
    %c3_9 = arith.constant 3 : index
    %c1_10 = arith.constant 1 : index
    %c0_11 = arith.constant 0 : index
    %12 = vector.load %arg2[%c3_9, %c1_10, %c0_11] : memref<4x128x128xf32, #tpu.memory_space<vmem>>, vector<1x1x128xf32>
    %13 = vector.shape_cast %12 : vector<1x1x128xf32> to vector<1x128xf32>
    %cst_12 = arith.constant dense<0.000000e+00> : vector<8x128xf32>
    %14 = tpu.matmul %9, %11, %cst_12 {dimension_numbers = #tpu.dot_dimension_numbers<[1], [0], [0], [1], [0, 0, 1, 1], [], []>} : vector<8x128xf32>, vector<128x128xf32>, vector<8x128xf32> -> vector<8x128xf32>
    %15 = vector.broadcast %13 : vector<1x128xf32> to vector<8x128xf32>
    %16 = arith.addf %14, %15 : vector<8x128xf32>
    %cst_13 = arith.constant 0.000000e+00 : f32
    %17 = vector.broadcast %cst_13 : f32 to vector<8x128xf32>
    %18 = arith.maximumf %16, %17 : vector<8x128xf32>
    %c2 = arith.constant 2 : index
    %c0_14 = arith.constant 0 : index
    %c0_15 = arith.constant 0 : index
    %19 = vector.load %arg2[%c2, %c0_14, %c0_15] : memref<4x128x128xf32, #tpu.memory_space<vmem>>, vector<1x128x32xf32>
    %20 = vector.shape_cast %19 : vector<1x128x32xf32> to vector<128x32xf32>
    %c3_16 = arith.constant 3 : index
    %c2_17 = arith.constant 2 : index
    %c0_18 = arith.constant 0 : index
    %21 = vector.load %arg2[%c3_16, %c2_17, %c0_18] : memref<4x128x128xf32, #tpu.memory_space<vmem>>, vector<1x1x32xf32>
    %22 = vector.shape_cast %21 : vector<1x1x32xf32> to vector<1x32xf32>
    %cst_19 = arith.constant dense<0.000000e+00> : vector<8x32xf32>
    %23 = tpu.matmul %18, %20, %cst_19 {dimension_numbers = #tpu.dot_dimension_numbers<[1], [0], [0], [1], [0, 0, 1, 1], [], []>} : vector<8x128xf32>, vector<128x32xf32>, vector<8x32xf32> -> vector<8x32xf32>
    %24 = vector.broadcast %22 : vector<1x32xf32> to vector<8x32xf32>
    %25 = arith.addf %23, %24 : vector<8x32xf32>
    %26 = arith.negf %25 : vector<8x32xf32>
    %27 = math.exp %26 : vector<8x32xf32>
    %cst_20 = arith.constant 1.000000e+00 : f32
    %28 = vector.broadcast %cst_20 : f32 to vector<8x32xf32>
    %29 = arith.addf %28, %27 : vector<8x32xf32>
    %30 = arith.divf %28, %29 : vector<8x32xf32>
    %c0_21 = arith.constant 0 : index
    %c0_22 = arith.constant 0 : index
    %31 = vector.load %arg3[%c0_21, %c0_22] : memref<8x32xf32, #tpu.memory_space<vmem>>, vector<8x32xf32>
    tpu.vector_store %arg3[%c0_21, %c0_22], %30 {strides = array<i32>} : memref<8x32xf32, #tpu.memory_space<vmem>>, vector<8x32xf32>,
    return
  }
  func.func @transform_0(%arg0: i32) -> (i32, i32) {
    %c0_i32 = arith.constant 0 : i32
    %c0_i32_0 = arith.constant 0 : i32
    return %arg0, %c0_i32 : i32, i32
  }
  func.func @transform_1(%arg0: i32) -> (i32, i32, i32) {
    %c0_i32 = arith.constant 0 : i32
    %c0_i32_0 = arith.constant 0 : i32
    %c0_i32_1 = arith.constant 0 : i32
    %c0_i32_2 = arith.constant 0 : i32
    return %c0_i32, %c0_i32_0, %c0_i32_1 : i32, i32, i32
  }
  func.func @transform_2(%arg0: i32) -> (i32, i32) {
    %c0_i32 = arith.constant 0 : i32
    %c0_i32_0 = arith.constant 0 : i32
    return %arg0, %c0_i32 : i32, i32
  }
}

</mosaic_0001>

<bundles_post_ra>
// kernel: tpu_custom_call.1
= control target key start
LH: loop header
LB: loop body
LE: loop exit
PB: predicated region body
PF: predicated region fallthrough
CT: control target
= control target key end

     0   :  { %7 = vsyncpa [#allocation3], 0  ;;  %s663_s0 = inlined_call_operand.hbm [shape: f32[8,8], index: 0, kind: input, shape index: {}]   ;;  %s664_s1 = inlined_call_operand.hbm [shape: f32[4,128,128], index: 1, kind: input, shape index: {}]   ;;  %s665_s2 = inlined_call_operand.hbm [shape: f32[8,32], index: 2, kind: output, shape index: {}]  }
   0x1   :  { %8 = vsyncpa [#allocation6], 0 }
   0x2   :  { %9 = vsyncpa [#allocation4], 0  ;;  %s578_s9 = smov [#allocation2]   ;;  %s579_s11 = smov [#allocation5]  }
   0x3   :  { %s16_s10 = sshll.u32 %s578_s9, 4  ;;  %s25_s12 = sshll.u32 %s579_s11, 4  ;;  %s17_s10 = int_to_ptr.vmem [resolvable:$true] %s16_s10  ;;  %s601_s12 = int_to_ptr.vmem [resolvable:$true] %s25_s12 }
   0x4   :  { %s506_s15 = scalar_lea.hbm %s663_s0, 128 }
   0x5   :  { %p507_p0 = scmp.ne.s32.totalorder %s663_s0, %s506_s15  ;;  %p510_p1 = scmp.lt.u32.totalorder %s506_s15, %s663_s0 }
   0x7   :  { %p512_p2 = pnand %p510_p1, %p507_p0 }
   0x9   :  { %515 = shalt.err (!%p512_p2)
}
   0xa   :  { %s516_s20 = scalar_lea.vmem %s17_s10, 128  ;;  %p521_p4 = scmp.lt.s32.totalorder %s17_s10, %s17_s10 }
   0xb   :  { %p517_p3 = scmp.ne.s32.totalorder %s17_s10, %s516_s20  ;;  %p522_p5 = scmp.lt.s32.totalorder %s516_s20, %s516_s20 }
   0xd   :  { %p523_p6 = por %p522_p5, %p521_p4 }
   0xf   :  { %p524_p7 = pnand %p523_p6, %p517_p3 }
  0x11   :  { %527 = shalt.err (!%p524_p7)
}
  0x12   :  { %19 = dma.hbm_to_vmem [thread:$0]  %s663_s0, 128, %s17_s10, [#allocation3]  }
  0x13   :  { %s528_s25 = scalar_lea.hbm %s664_s1, 8192 }
  0x14   :  { %p529_p8 = scmp.ne.s32.totalorder %s664_s1, %s528_s25  ;;  %p532_p9 = scmp.lt.u32.totalorder %s528_s25, %s664_s1 }
  0x16   :  { %p534_p10 = pnand %p532_p9, %p529_p8 }
  0x18   :  { %537 = shalt.err (!%p534_p10)
}
  0x19   :  { %s538_s30 = scalar_lea.vmem %s601_s12, 8192  ;;  %p543_p12 = scmp.lt.s32.totalorder %s601_s12, %s601_s12 }
  0x1a   :  { %p539_p11 = scmp.ne.s32.totalorder %s601_s12, %s538_s30  ;;  %p544_p13 = scmp.lt.s32.totalorder %s538_s30, %s538_s30 }
  0x1c   :  { %p545_p0 = por %p544_p13, %p543_p12 }
  0x1e   :  { %p546_p1 = pnand %p545_p0, %p539_p11 }
  0x20   :  { %549 = shalt.err (!%p546_p1)
}
  0x21   :  { %s580_s0 = smov 128   ;;  %s581_s3 = smov 8  }
  0x22   :  { %31 = dma.hbm_to_vmem [thread:$0]  %s664_s1, 8192, %s601_s12, [#allocation6], %s580_s0, %s580_s0, %s581_s3  }
  0x23   :  { %572 = dma.done.wait [#allocation3], 128  }
  0x24   :  { %573 = vsyncadd [#allocation3], 4294967168 }
  0x25   :  { %574 = dma.done.wait [#allocation6], 8192  }
  0x26   :  { %575 = vsyncadd [#allocation6], 4294959104  ;;  %v582_v0 = vmov 0.0   ;;  %vm583_vm0 = vmmov 0   ;;  %v584_v1 = vmov 0.0|0.0   ;;  %vm46_vm1 = vcmask 64512  }
  0x27   :  { %371 = vmatprep.subr.mxu0 %v582_v0  ;;  %373 = vmatprep.mubr.msk.f32.mxu0 %vm583_vm0, %v582_v0  ;;  %v39_v2 = vld [vmem:[#allocation5] sm:$0xff]  ;;  %v38_v3 = vld [vmem:[#allocation2] sm:$0xff]  ;;  %v123_v5 = vld [vmem:[#allocation5 + $0x88] sm:$0xff]  ;;  %s585_s1 = smov [#allocation7]   ;;  %vm312_vm2 = vcmask 261120  }
  0x28   :  { %446 = vmatprep.subr.bf16.mxu1 %v584_v1  ;;  %408 = vmatprep.mubr.msk.f32.mxu1 %vm583_vm0, %v582_v0  ;;  %v122_v4 = vld [vmem:[#allocation5 + $0x80] sm:$0xff]  ;;  %v124_v6 = vld [vmem:[#allocation5 + $0x90] sm:$0xff]  ;;  %v125_v7 = vld [vmem:[#allocation5 + $0x98] sm:$0xff]  ;;  %s320_s6 = sshll.u32 %s585_s1, 4  ;;  %s321_s6 = int_to_ptr.vmem [resolvable:$true] %s320_s6 }
  0x29   :  { %372 = vmatpush3.msra.mxu0 %v39_v2  ;;  %v447_v8 = vpack.c.bf16 %v123_v5, %v122_v4  ;;  %v450_v9 = vpack.c.bf16 %v125_v7, %v124_v6  ;;  %v126_v10 = vld [vmem:[#allocation5 + $0xa0] sm:$0xff]  ;;  %v127_v11 = vld [vmem:[#allocation5 + $0xa8] sm:$0xff]  ;;  %v128_v13 = vld [vmem:[#allocation5 + $0xb0] sm:$0xff]  ;;  %s550_s7 = scalar_lea.vmem %s321_s6, 128  ;;  %p555_p3 = scmp.lt.s32.totalorder %s321_s6, %s321_s6 }
  0x2a   :  { %374 = vmatmul.mubr.msk.f32.vlgmr.msra.gmra.mrb[0].mxu0 %vm46_vm1, %v38_v3  ;;  %470 = vmatprep.subr.bf16.mxu0 %v584_v1  ;;  %v453_v12 = vpack.c.bf16 %v127_v11, %v126_v10  ;;  %v129_v14 = vld [vmem:[#allocation5 + $0xb8] sm:$0xff]  ;;  %v130_v16 = vld [vmem:[#allocation5 + $0xc0] sm:$0xff]  ;;  %v131_v17 = vld [vmem:[#allocation5 + $0xc8] sm:$0xff]  ;;  %p551_p2 = scmp.ne.s32.totalorder %s321_s6, %s550_s7  ;;  %p556_p4 = scmp.lt.s32.totalorder %s550_s7, %s550_s7 }
  0x2b   :  { %443 = vmatprep.mubr.msk.f32.mxu0 %vm583_vm0, %v582_v0  ;;  %448 = vmatpush3.bf16.msra.mxu1 %v447_v8  ;;  %v456_v15 = vpack.c.bf16 %v129_v14, %v128_v13  ;;  %v459_v18 = vpack.c.bf16 %v131_v17, %v130_v16  ;;  %v132_v19 = vld [vmem:[#allocation5 + $0xd0] sm:$0xff]  ;;  %v133_v20 = vld [vmem:[#allocation5 + $0xd8] sm:$0xff]  ;;  %v134_v22 = vld [vmem:[#allocation5 + $0xe0] sm:$0xff] }
  0x2c   :  { %449 = vmatprep.subr.bf16.mxu1 %v584_v1  ;;  %v462_v21 = vpack.c.bf16 %v133_v20, %v132_v19  ;;  %v135_v23 = vld [vmem:[#allocation5 + $0xe8] sm:$0xff]  ;;  %v136_v25 = vld [vmem:[#allocation5 + $0xf0] sm:$0xff]  ;;  %v137_v26 = vld [vmem:[#allocation5 + $0xf8] sm:$0xff]  ;;  %p557_p5 = por %p556_p4, %p555_p3 }
  0x2d   :  { %v465_v24 = vpack.c.bf16 %v135_v23, %v134_v22  ;;  %v468_v27 = vpack.c.bf16 %v137_v26, %v136_v25  ;;  %v215_v28 = vld [vmem:[#allocation5 + $0x100] sm:$0xff]  ;;  %v216_v29 = vld [vmem:[#allocation5 + $0x108] sm:$0xff]  ;;  %v217_v30 = vld [vmem:[#allocation5 + $0x110] sm:$0xff] }
  0x2e   :  { %v471_v31 = vpack.c.bf16 %v216_v29, %v215_v28  ;;  %v218_v32 = vld [vmem:[#allocation5 + $0x118] sm:$0xff]  ;;  %v219_v34 = vld [vmem:[#allocation5 + $0x120] sm:$0xff]  ;;  %v220_v35 = vld [vmem:[#allocation5 + $0x128] sm:$0xff]  ;;  %p558_p6 = pnand %p557_p5, %p551_p2 }
  0x2f   :  { %451 = vmatpush3.bf16.msra.mxu1 %v450_v9  ;;  %v474_v33 = vpack.c.bf16 %v218_v32, %v217_v30  ;;  %v477_v36 = vpack.c.bf16 %v220_v35, %v219_v34  ;;  %v221_v37 = vld [vmem:[#allocation5 + $0x130] sm:$0xff]  ;;  %v222_v38 = vld [vmem:[#allocation5 + $0x138] sm:$0xff]  ;;  %v223_v40 = vld [vmem:[#allocation5 + $0x140] sm:$0xff] }
  0x30   :  { %452 = vmatprep.subr.bf16.mxu1 %v584_v1  ;;  %472 = vmatpush3.bf16.msra.mxu0 %v471_v31  ;;  %v480_v39 = vpack.c.bf16 %v222_v38, %v221_v37  ;;  %v224_v41 = vld [vmem:[#allocation5 + $0x148] sm:$0xff]  ;;  %v225_v43 = vld [vmem:[#allocation5 + $0x150] sm:$0xff]  ;;  %v226_v44 = vld [vmem:[#allocation5 + $0x158] sm:$0xff] }
  0x31   :  { %473 = vmatprep.subr.bf16.mxu0 %v584_v1  ;;  %v483_v42 = vpack.c.bf16 %v224_v41, %v223_v40  ;;  %v486_v45 = vpack.c.bf16 %v226_v44, %v225_v43  ;;  %v227_v46 = vld [vmem:[#allocation5 + $0x160] sm:$0xff]  ;;  %v228_v47 = vld [vmem:[#allocation5 + $0x168] sm:$0xff]  ;;  %v229_v54 = vld [vmem:[#allocation5 + $0x170] sm:$0xff] }
  0x32   :  { %v489_v48 = vpack.c.bf16 %v228_v47, %v227_v46  ;;  %v330_v49 = vld [vmem:[#allocation5 + $0x180] ss:$0 sm:$0xff]  ;;  %v230_v55 = vld [vmem:[#allocation5 + $0x178] sm:$0xff]  ;;  %v332_v57 = vld [vmem:[#allocation5 + $0x181] ss:$0 sm:$0xff] }
  0x33   :  { %454 = vmatpush3.bf16.msra.mxu1 %v453_v12  ;;  %v492_v56 = vpack.c.bf16 %v230_v55, %v229_v54  ;;  %v333_v62 = vld [vmem:[#allocation5 + $0x182] ss:$0 sm:$0xff] }
  0x34   :  { %455 = vmatprep.subr.bf16.mxu1 %v584_v1  ;;  %475 = vmatpush3.bf16.msra.mxu0 %v474_v33 }
  0x35   :  { %476 = vmatprep.subr.bf16.mxu0 %v584_v1 }
  0x37   :  { %457 = vmatpush3.bf16.msra.mxu1 %v456_v15 }
  0x38   :  { %458 = vmatprep.subr.bf16.mxu1 %v584_v1  ;;  %478 = vmatpush3.bf16.msra.mxu0 %v477_v36 }
  0x39   :  { %479 = vmatprep.subr.bf16.mxu0 %v584_v1 }
  0x3b   :  { %460 = vmatpush3.bf16.msra.mxu1 %v459_v18 }
  0x3c   :  { %461 = vmatprep.subr.bf16.mxu1 %v584_v1  ;;  %481 = vmatpush3.bf16.msra.mxu0 %v480_v39 }
  0x3d   :  { %482 = vmatprep.subr.bf16.mxu0 %v584_v1 }
  0x3f   :  { %463 = vmatpush3.bf16.msra.mxu1 %v462_v21 }
  0x40   :  { %464 = vmatprep.subr.bf16.mxu1 %v584_v1  ;;  %484 = vmatpush3.bf16.msra.mxu0 %v483_v42 }
  0x41   :  { %485 = vmatprep.subr.bf16.mxu0 %v584_v1 }
  0x43   :  { %466 = vmatpush3.bf16.msra.mxu1 %v465_v24 }
  0x44   :  { %467 = vmatprep.subr.bf16.mxu1 %v584_v1  ;;  %487 = vmatpush3.bf16.msra.mxu0 %v486_v45 }
  0x45   :  { %488 = vmatprep.subr.bf16.mxu0 %v584_v1 }
  0x47   :  { %469 = vmatpush3.bf16.msra.mxu1 %v468_v27 }
  0x48   :  { %490 = vmatpush3.bf16.msra.mxu0 %v489_v48 }
  0x49   :  { %491 = vmatprep.subr.bf16.mxu0 %v584_v1 }
  0x4c   :  { %493 = vmatpush3.bf16.msra.mxu0 %v492_v56 }
  0xfd   :  { %v116_v50 = vpop.f32.mrb[0].mxu0 }
  0xfe   :  { %v117_v51 = vadd.f32 %v330_v49, %v116_v50  ;;  %v375_v52 = vpop.f32.mrb[1].mxu0 }
 0x100   :  { %v120_v53 = vmax.f32 %v117_v51, 0.0 }
 0x102   :  { %409 = vmatmul.mubr.f32.vlgmr.msra.gmra.mrb[0].mxu1 %v120_v53 }
 0x1d5   :  { %v209_v58 = vpop.f32.mrb[0].mxu1 }
 0x1d6   :  { %v210_v59 = vadd.f32 %v332_v57, %v209_v58  ;;  %v410_v60 = vpop.f32.mrb[1].mxu1 }
 0x1d8   :  { %v213_v61 = vmax.f32 %v210_v59, 0.0 }
 0x1da   :  { %444 = vmatmul.mubr.f32.vlgmr.msra.gmra.mrb[2].mxu0 %v213_v61 }
 0x2ad   :  { %v302_v63 = vpop.f32.mrb[2].mxu0 }
 0x2ae   :  { %v303_v0 = vadd.f32 %v333_v62, %v302_v63  ;;  %v445_v1 = vpop.f32.mrb[3].mxu0 }
 0x2b0   :  { %v334_v2 = vmul.f32 -1.442695, %v303_v0 }
 0x2b2   :  { %502 = vpow2.f32 %v334_v2 }
 0x2bc   :  { %v503_v3 = vpop.eup %502 }
 0x2bd   :  { %v309_v4 = vadd.f32 1.0, %v503_v3 }
 0x2bf   :  { %504 = vrcp.f32 %v309_v4 }
 0x2c9   :  { %v505_v5 = vpop.eup %504 }
 0x2ca   :  { %313 = vst.msk [vmem:[#allocation7] sm:$0xff] %vm312_vm2, %v505_v5 }
 0x2cb   :  { %561 = shalt.err (!%p558_p6)
}
 0x2cc   :  { %s562_s10 = scalar_lea.hbm %s665_s2, 128 }
 0x2cd   :  { %p563_p7 = scmp.ne.s32.totalorder %s665_s2, %s562_s10  ;;  %p566_p8 = scmp.lt.u32.totalorder %s562_s10, %s665_s2 }
 0x2cf   :  { %p568_p9 = pnand %p566_p8, %p563_p7 }
 0x2d1   :  { %571 = shalt.err (!%p568_p9)
}
 0x2d2   :  { %323 = dma.vmem_to_hbm [thread:$0]  %s321_s6, 128, %s665_s2, [#allocation4]  }
 0x2d3   :  { %576 = dma.done.wait [#allocation4], 128  }
 0x2d4   :  { %577 = vsyncadd [#allocation4], 4294967168 }
 0x2d5   :  { %327 = vsyncpa [#allocation3], 1 }
 0x2d6   :  { %328 = vsyncpa [#allocation6], 1 }
 0x2d7   :  { %329 = vsyncpa [#allocation4], 1 }

</bundles_post_ra>
